<compile_context>
chip_gen: v7x
topology: tpu7x:2x2x1
jax: 0.10.0
libtpu: 0.0.40
codegen_flags: <defaults>
</compile_context>

<pallas_src>
import math
import functools

import jax
import jax.numpy as jnp
from jax.experimental import pallas as pl
from jax.experimental.pallas import tpu as pltpu


def _attn_kernel(*refs, has_mask, return_weights, scale):
    """One grid step == (batch block i) x (query tile qi).

    refs layout: [vl_ref?] q_ref k_ref v_ref  o_ref [w_ref?]
      vl_ref: (Bb, 1, 1) int32     q_ref: (Bb, Tq, D)
      k_ref : (Bb, K, D)           v_ref: (Bb, K, Dv)
      o_ref : (Bb, Tq, Dv)         w_ref: (Bb, Tq, K)
    """
    i = 0
    vl_ref = None
    if has_mask:
        vl_ref = refs[i]
        i += 1
    q_ref, k_ref, v_ref = refs[i], refs[i + 1], refs[i + 2]
    i += 3
    o_ref = refs[i]
    i += 1
    w_ref = refs[i] if return_weights else None

    q = q_ref[...]            # (Bb, Tq, D)
    k = k_ref[...]            # (Bb, K, D)
    v = v_ref[...]            # (Bb, K, Dv)

    # Fold the softmax scale into Q (Bb*Tq*D elements instead of Bb*Tq*K).
    qs = q * jnp.asarray(scale, dtype=q.dtype)

    # scores = Q @ K^T / sqrt(d): contraction over the shared last dim of both
    # operands -> Mosaic feeds K directly as the MXU RHS (no explicit transpose).
    scores = jnp.einsum("bqd,bkd->bqk", qs, k,
                        preferred_element_type=jnp.float32)   # (Bb, Tq, K) f32

    if has_mask:
        # masked softmax: key positions >= valid_len get -1e6 before softmax
        vl = vl_ref[...]                                      # (Bb, 1, 1) int32
        col = jax.lax.broadcasted_iota(jnp.int32, scores.shape, dimension=2)
        scores = jnp.where(col < vl, scores, jnp.float32(-1000000.0))

    # Numerically-stable softmax with exact normalization (rows sum to 1,
    # matching torch.softmax; only Bb*Tq exact reciprocals so cost is tiny).
    m = jnp.max(scores, axis=-1, keepdims=True)
    e = jnp.exp(scores - m)
    denom = jnp.sum(e, axis=-1, keepdims=True)
    w = e * (1.0 / denom)                                     # (Bb, Tq, K) f32

    # Cast once; reused for both the weights writeback and the PV matmul.
    w_cast = w.astype(v.dtype)
    if return_weights:
        w_ref[...] = w_cast.astype(w_ref.dtype)

    # output = attention_weights @ V   (dropout == identity in eval mode)
    o_ref[...] = jnp.einsum("bqk,bkv->bqv", w_cast, v,
                            preferred_element_type=jnp.float32
                            ).astype(o_ref.dtype)


def _vmem_budget_bytes():
    """(per-step block budget, scoped-VMEM limit) derived from the chip generation."""
    try:
        cap = int(pltpu.get_tpu_info().vmem_capacity_bytes)
    except Exception:
        # Unknown chip / query unavailable: assume the smallest (v7x: 64 MiB/TC),
        # which is safe on every generation.
        cap = 64 * 1024 * 1024
    block_budget = int(cap * 0.60)   # headroom for compiler-internal scratch
    vmem_limit = int(cap * 0.75)     # ~96 MiB on v5e/v6e, ~48 MiB on v7x
    return block_budget, vmem_limit


def _peak_block_bytes(bb, tq, K, D, Dv, itemsize, with_weights, with_mask):
    """Estimated VMEM peak per grid step: 2x pipelined (double-buffered) in/out
    blocks + single-buffered in-kernel f32 temporaries counted once."""
    pipelined = bb * (tq * D + K * D + K * Dv + tq * Dv) * itemsize
    if with_weights:
        pipelined += bb * tq * K * itemsize
    if with_mask:
        pipelined += 8 * 128 * 4                 # padded (Bb,1,1) int32 tile
    # scores, exp, mask compare, cast weights ~= 4 copies of the f32 score tile.
    temporaries = 4 * bb * tq * K * 4
    return 2 * pipelined + temporaries


def _choose_tiles(B, Q, K, D, Dv, itemsize, with_weights, with_mask, block_budget):
    """Largest (Bb, Tq) block that fits the budget; then prefer >= 2 grid steps
    so v7x's two TensorCores both get work on the 'parallel' axes."""
    b_divs = [d for d in range(B, 0, -1) if B % d == 0]
    # Tq (second-to-last block dim of q/o/w) must be a multiple of 8 or full Q.
    q_tiles = [d for d in range(Q, 0, -1) if Q % d == 0 and (d == Q or d % 8 == 0)]

    best = None
    for tq in q_tiles:
        for bb in b_divs:
            if _peak_block_bytes(bb, tq, K, D, Dv, itemsize,
                                 with_weights, with_mask) <= block_budget:
                if best is None or bb * tq > best[0] * best[1]:
                    best = (bb, tq)
                break                              # largest fitting Bb for this Tq
    if best is None:
        # Nothing fits (huge K): smallest legal block; rely on vmem_limit headroom.
        # TODO(synk): flash-style K tiling would bound VMEM here independent of K.
        best = (1, q_tiles[-1])
    bb, tq = best

    if (B // bb) * (Q // tq) < 2:                  # give the 2nd TensorCore work
        if B >= 2:
            bb = max(d for d in b_divs if d <= B // 2)
        else:
            smaller = [d for d in q_tiles if d <= Q // 2]
            if smaller:
                tq = max(smaller)
    return bb, tq


@functools.partial(jax.jit, static_argnames=("return_weights",))
def dot_product_attention(queries, keys, values, valid_lens=None,
                          return_weights=True):
    """Pallas TPU implementation of DotProductAttention.forward (eval mode).

    Returns (output, attention_weights) when return_weights=True, else output.
    """
    B, Q, D = queries.shape
    _, K, _ = keys.shape
    Dv = values.shape[-1]
    has_mask = valid_lens is not None

    block_budget, vmem_limit = _vmem_budget_bytes()
    Bb, Tq = _choose_tiles(B, Q, K, D, Dv, queries.dtype.itemsize,
                           return_weights, has_mask, block_budget)
    grid = (B // Bb, Q // Tq)

    kernel = functools.partial(_attn_kernel, has_mask=has_mask,
                               return_weights=return_weights,
                               scale=1.0 / math.sqrt(D))

    inputs = []
    in_specs = []
    if has_mask:
        vl3 = valid_lens.astype(jnp.int32).reshape(B, 1, 1)
        inputs.append(vl3)
        in_specs.append(pl.BlockSpec((Bb, 1, 1), lambda i, qi: (i, 0, 0)))
    inputs += [queries, keys, values]
    in_specs += [
        pl.BlockSpec((Bb, Tq, D), lambda i, qi: (i, qi, 0)),
        pl.BlockSpec((Bb, K, D), lambda i, qi: (i, 0, 0)),
        pl.BlockSpec((Bb, K, Dv), lambda i, qi: (i, 0, 0)),
    ]

    out_shape = [jax.ShapeDtypeStruct((B, Q, Dv), queries.dtype)]
    out_specs = [pl.BlockSpec((Bb, Tq, Dv), lambda i, qi: (i, qi, 0))]
    if return_weights:
        out_shape.append(jax.ShapeDtypeStruct((B, Q, K), queries.dtype))
        out_specs.append(pl.BlockSpec((Bb, Tq, K), lambda i, qi: (i, qi, 0)))

    grid_spec = pltpu.PrefetchScalarGridSpec(
        num_scalar_prefetch=0,
        grid=grid,
        in_specs=in_specs,
        out_specs=out_specs,
    )

    outs = pl.pallas_call(
        kernel,
        out_shape=tuple(out_shape),
        grid_spec=grid_spec,
        compiler_params=pltpu.CompilerParams(
            dimension_semantics=("parallel", "parallel"),
            vmem_limit_bytes=vmem_limit),
    )(*inputs)

    if return_weights:
        return outs[0], outs[1]
    return outs[0]


def _reference(queries, keys, values, valid_lens):
    """Plain-JAX reference mirroring the PyTorch module exactly."""
    d = queries.shape[-1]
    scores = jnp.einsum("bqd,bkd->bqk", queries, keys) / math.sqrt(d)
    if valid_lens is not None:
        K = keys.shape[1]
        mask = jnp.arange(K)[None, None, :] < valid_lens[:, None, None]
        scores = jnp.where(mask, scores, -1000000.0)
    weights = jax.nn.softmax(scores, axis=-1)
    return jnp.einsum("bqk,bkv->bqv", weights, values), weights


if __name__ == "__main__":
    key = jax.random.PRNGKey(0)
    k1, k2, k3 = jax.random.split(key, 3)

    B, Q, K, D, Dv = 2, 8, 8, 32, 32
    queries = jax.random.normal(k1, (B, Q, D), dtype=jnp.float32)
    keys = jax.random.normal(k2, (B, K, D), dtype=jnp.float32)
    values = jax.random.normal(k3, (B, K, Dv), dtype=jnp.float32)
    valid_lens = jnp.array([3, 6], dtype=jnp.int32)

    # masked path
    out, attn_w = dot_product_attention(queries, keys, values, valid_lens)
    out = jax.block_until_ready(out)
    attn_w = jax.block_until_ready(attn_w)
    ref_out, ref_w = _reference(queries, keys, values, valid_lens)
    assert jnp.allclose(out, ref_out, atol=2e-5, rtol=2e-5), "output mismatch"
    assert jnp.allclose(attn_w, ref_w, atol=2e-5, rtol=2e-5), "weights mismatch"

    # valid_lens=None path (mask code compiled out entirely)
    out2, attn_w2 = dot_product_attention(queries, keys, values, None)
    out2 = jax.block_until_ready(out2)
    ref_out2, ref_w2 = _reference(queries, keys, values, None)
    assert jnp.allclose(out2, ref_out2, atol=2e-5, rtol=2e-5), "output mismatch (no mask)"
    assert jnp.allclose(attn_w2, ref_w2, atol=2e-5, rtol=2e-5), "weights mismatch (no mask)"

    # output-only path (drops the (B, Q, K) weights writeback)
    out3 = dot_product_attention(queries, keys, values, valid_lens,
                                 return_weights=False)
    out3 = jax.block_until_ready(out3)
    assert jnp.allclose(out3, ref_out, atol=2e-5, rtol=2e-5), "output mismatch (no weights)"

    print("KERNEL_OK")
</pallas_src>

<mosaic_0001>
module attributes {stable_mosaic.version = 11 : i64} {
  func.func @_attn_kernel(%arg0: i32, %arg1: i32, %arg2: memref<1x1x1xi32, #tpu.memory_space<vmem>>, %arg3: memref<1x8x32xf32, #tpu.memory_space<vmem>>, %arg4: memref<1x8x32xf32, #tpu.memory_space<vmem>>, %arg5: memref<1x8x32xf32, #tpu.memory_space<vmem>>, %arg6: memref<1x8x32xf32, #tpu.memory_space<vmem>>, %arg7: memref<1x8x8xf32, #tpu.memory_space<vmem>>) attributes {dimension_semantics = [#tpu.dimension_semantics<parallel>, #tpu.dimension_semantics<parallel>], iteration_bounds = array<i64: 2, 1>, scalar_prefetch = 0 : i64, scratch_operands = 0 : i64, tpu.core_type = #tpu.core_type<tc>, window_params = [{transform_indices = @transform_0, window_bounds = array<i64: 1, 1, 1>}, {transform_indices = @transform_1, window_bounds = array<i64: 1, 8, 32>}, {transform_indices = @transform_2, window_bounds = array<i64: 1, 8, 32>}, {transform_indices = @transform_3, window_bounds = array<i64: 1, 8, 32>}, {transform_indices = @transform_4, window_bounds = array<i64: 1, 8, 32>}, {transform_indices = @transform_5, window_bounds = array<i64: 1, 8, 8>}]} {
    %c0 = arith.constant 0 : index
    %c0_0 = arith.constant 0 : index
    %c0_1 = arith.constant 0 : index
    %0 = vector.load %arg3[%c0, %c0_0, %c0_1] : memref<1x8x32xf32, #tpu.memory_space<vmem>>, vector<1x8x32xf32>
    %c0_2 = arith.constant 0 : index
    %c0_3 = arith.constant 0 : index
    %c0_4 = arith.constant 0 : index
    %1 = vector.load %arg4[%c0_2, %c0_3, %c0_4] : memref<1x8x32xf32, #tpu.memory_space<vmem>>, vector<1x8x32xf32>
    %c0_5 = arith.constant 0 : index
    %c0_6 = arith.constant 0 : index
    %c0_7 = arith.constant 0 : index
    %2 = vector.load %arg5[%c0_5, %c0_6, %c0_7] : memref<1x8x32xf32, #tpu.memory_space<vmem>>, vector<1x8x32xf32>
    %cst = arith.constant 0.176776692 : f32
    %3 = vector.broadcast %cst : f32 to vector<1x8x32xf32>
    %4 = arith.mulf %0, %3 : vector<1x8x32xf32>
    "tpu.trace_start"() <{level = 10 : i32, message = "bqd,bkd->bqk"}> : () -> ()
    %cst_8 = arith.constant dense<0.000000e+00> : vector<1x8x8xf32>
    %5 = tpu.matmul %4, %1, %cst_8 {dimension_numbers = #tpu.dot_dimension_numbers<[2], [2], [1], [1], [0, 0, 0, 1, 1, 1], [0], [0]>} : vector<1x8x32xf32>, vector<1x8x32xf32>, vector<1x8x8xf32> -> vector<1x8x8xf32>
    "tpu.trace_stop"() : () -> ()
    %c0_9 = arith.constant 0 : index
    %c0_10 = arith.constant 0 : index
    %c0_11 = arith.constant 0 : index
    %6 = vector.load %arg2[%c0_9, %c0_10, %c0_11] : memref<1x1x1xi32, #tpu.memory_space<vmem>>, vector<1x1x1xi32>
    %7 = tpu.iota {dimensions = array<i32: 2>} : vector<1x8x8xi32>
    %8 = vector.broadcast %6 : vector<1x1x1xi32> to vector<1x8x8xi32>
    %9 = arith.cmpi slt, %7, %8 : vector<1x8x8xi32>
    %cst_12 = arith.constant -1.000000e+06 : f32
    %10 = vector.broadcast %cst_12 : f32 to vector<1x8x8xf32>
    %11 = arith.select %9, %5, %10 : vector<1x8x8xi1>, vector<1x8x8xf32>
    %cst_13 = arith.constant dense<0xFF800000> : vector<1x8xf32>
    %12 = vector.multi_reduction <maximumf>, %11, %cst_13 [2] : vector<1x8x8xf32> to vector<1x8xf32>
    %13 = vector.shape_cast %12 : vector<1x8xf32> to vector<1x8x1xf32>
    %14 = vector.broadcast %13 : vector<1x8x1xf32> to vector<1x8x8xf32>
    %15 = arith.subf %11, %14 : vector<1x8x8xf32>
    %16 = math.exp %15 : vector<1x8x8xf32>
    %cst_14 = arith.constant dense<0.000000e+00> : vector<1x8xf32>
    %17 = vector.multi_reduction <add>, %16, %cst_14 [2] : vector<1x8x8xf32> to vector<1x8xf32>
    %18 = vector.shape_cast %17 : vector<1x8xf32> to vector<1x8x1xf32>
    %cst_15 = arith.constant 1.000000e+00 : f32
    %19 = vector.broadcast %cst_15 : f32 to vector<1x8x1xf32>
    %20 = arith.divf %19, %18 : vector<1x8x1xf32>
    %21 = vector.broadcast %20 : vector<1x8x1xf32> to vector<1x8x8xf32>
    %22 = arith.mulf %16, %21 : vector<1x8x8xf32>
    %c0_16 = arith.constant 0 : index
    %c0_17 = arith.constant 0 : index
    %c0_18 = arith.constant 0 : index
    %23 = vector.load %arg7[%c0_16, %c0_17, %c0_18] : memref<1x8x8xf32, #tpu.memory_space<vmem>>, vector<1x8x8xf32>
    tpu.vector_store %arg7[%c0_16, %c0_17, %c0_18], %22 {strides = array<i32>} : memref<1x8x8xf32, #tpu.memory_space<vmem>>, vector<1x8x8xf32>,
    "tpu.trace_start"() <{level = 10 : i32, message = "bqk,bkv->bqv"}> : () -> ()
    %cst_19 = arith.constant dense<0.000000e+00> : vector<1x8x32xf32>
    %24 = tpu.matmul %22, %2, %cst_19 {dimension_numbers = #tpu.dot_dimension_numbers<[2], [1], [1], [2], [0, 0, 0, 1, 1, 2], [0], [0]>} : vector<1x8x8xf32>, vector<1x8x32xf32>, vector<1x8x32xf32> -> vector<1x8x32xf32>
    "tpu.trace_stop"() : () -> ()
    %c0_20 = arith.constant 0 : index
    %c0_21 = arith.constant 0 : index
    %c0_22 = arith.constant 0 : index
    %25 = vector.load %arg6[%c0_20, %c0_21, %c0_22] : memref<1x8x32xf32, #tpu.memory_space<vmem>>, vector<1x8x32xf32>
    tpu.vector_store %arg6[%c0_20, %c0_21, %c0_22], %24 {strides = array<i32>} : memref<1x8x32xf32, #tpu.memory_space<vmem>>, vector<1x8x32xf32>,
    return
  }
  func.func @transform_0(%arg0: i32, %arg1: i32) -> (i32, i32, i32) {
    %c0_i32 = arith.constant 0 : i32
    %c0_i32_0 = arith.constant 0 : i32
    %c0_i32_1 = arith.constant 0 : i32
    return %arg0, %c0_i32, %c0_i32_0 : i32, i32, i32
  }
  func.func @transform_1(%arg0: i32, %arg1: i32) -> (i32, i32, i32) {
    %c0_i32 = arith.constant 0 : i32
    %c0_i32_0 = arith.constant 0 : i32
    return %arg0, %arg1, %c0_i32 : i32, i32, i32
  }
  func.func @transform_2(%arg0: i32, %arg1: i32) -> (i32, i32, i32) {
    %c0_i32 = arith.constant 0 : i32
    %c0_i32_0 = arith.constant 0 : i32
    %c0_i32_1 = arith.constant 0 : i32
    return %arg0, %c0_i32, %c0_i32_0 : i32, i32, i32
  }
  func.func @transform_3(%arg0: i32, %arg1: i32) -> (i32, i32, i32) {
    %c0_i32 = arith.constant 0 : i32
    %c0_i32_0 = arith.constant 0 : i32
    %c0_i32_1 = arith.constant 0 : i32
    return %arg0, %c0_i32, %c0_i32_0 : i32, i32, i32
  }
  func.func @transform_4(%arg0: i32, %arg1: i32) -> (i32, i32, i32) {
    %c0_i32 = arith.constant 0 : i32
    %c0_i32_0 = arith.constant 0 : i32
    return %arg0, %arg1, %c0_i32 : i32, i32, i32
  }
  func.func @transform_5(%arg0: i32, %arg1: i32) -> (i32, i32, i32) {
    %c0_i32 = arith.constant 0 : i32
    %c0_i32_0 = arith.constant 0 : i32
    return %arg0, %arg1, %c0_i32 : i32, i32, i32
  }
}

</mosaic_0001>

<bundles_post_ra>
// kernel: dot_product_attention.1
= control target key start
LH: loop header
LB: loop body
LE: loop exit
PB: predicated region body
PF: predicated region fallthrough
CT: control target
= control target key end

     0   :  { %s1412_s0 = inlined_call_operand.vmem [shape: s32[2,1,1], index: 0, kind: input, shape index: {}]   ;;  %s1413_s1 = inlined_call_operand.hbm [shape: f32[2,8,32], index: 1, kind: input, shape index: {}]   ;;  %s1414_s2 = inlined_call_operand.hbm [shape: f32[2,8,32], index: 2, kind: input, shape index: {}]   ;;  %s1415_s3 = inlined_call_operand.hbm [shape: f32[2,8,32], index: 3, kind: input, shape index: {}]   ;;  %s1416_s4 = inlined_call_operand.hbm [shape: f32[2,8,32], index: 4, kind: output, shape index: {0}]   ;;  %s1417_s5 = inlined_call_operand.hbm [shape: f32[2,8,8], index: 5, kind: output, shape index: {1}]  }
   0x1   :  { %1427 = sst [smem:[#allocation20_spill]] %s1414_s2 }
   0x2   :  { %11 = vsyncpa [#allocation3], 0 }
   0x3   :  { %13 = vsyncpa [#allocation3 + $0x1], 0 }
   0x4   :  { %14 = vsyncpa [#allocation6], 0 }
   0x5   :  { %16 = vsyncpa [#allocation6 + $0x1], 0 }
   0x6   :  { %17 = vsyncpa [#allocation4], 0 }
   0x7   :  { %19 = vsyncpa [#allocation4 + $0x1], 0 }
   0x8   :  { %20 = vsyncpa [#allocation10], 0 }
   0x9   :  { %22 = vsyncpa [#allocation10 + $0x1], 0  ;;  %s1108_s18 = smov 0   ;;  %s1110_s19 = smov 0  }
   0xa   :  { %s1112_s20 = smov 0   ;;  %s1114_s21 = smov 0  }
   0xb   :  { %s1116_s22 = smov 0   ;;  %s1118_s23 = smov 0  }
   0xc LB: > { %1428 = sst [smem:[#allocation15_spill]] %s1064_s22  ;;  %s1139_s24 = sadd.s32 4294967295, %s1068_s23   ;;  %s1068_s23 = sphi %s1118_s23, %s28_s23   ;;  %s1064_s22 = sphi %s1116_s22, %s1454_s22   ;;  %s1060_s21 = sphi %s1114_s21, %s1453_s21   ;;  %s1056_s20 = sphi %s1112_s20, %s1457_s20   ;;  %s1052_s19 = sphi %s1110_s19, %s1456_s19   ;;  %s1048_s18 = sphi %s1108_s18, %s1455_s18  }
   0xd   : > { %1429 = sst [smem:[#allocation16_spill]] %s1068_s23  ;;  %s736_s25 = sadd.s32 4294967294, %s1068_s23  }
   0xe   : > { %s40_s26 = sadd.s32 1, %s1064_s22  ;;  %s75_s27 = sadd.s32 1, %s1056_s20 }
   0xf   : > { %p42_p0 = scmp.ge.s32.totalorder %s40_s26, 2  ;;  %p82_p1 = scmp.ne.s32.totalorder %s1056_s20, %s1052_s19 }
  0x10   : > { %p83_p2 = scmp.eq.s32.totalorder %s1068_s23, 0  ;;  %p88_p3 = scmp.ne.s32.totalorder %s1052_s19, %s1048_s18 }
  0x11   : > { %s1459_s26 = smov (%p42_p0, %s40_s26), 0  ;;  %p89_p5 = scmp.eq.s32.totalorder %s1139_s24, 0 }
  0x12   : > { %1430 = sst [smem:[#allocation17_spill]] %s1459_s26  ;;  %p1151_p4 = por %p83_p2, %p82_p1 }
  0x13   : > { %s70_s29 = ssub.s32 %s1064_s22, %s1459_s26  ;;  %p166_p6 = scmp.eq.s32.totalorder %s1139_s24, 1 }
  0x14   : > { %p73_p7 = scmp.eq.s32.totalorder %s70_s29, 0  ;;  %p1159_p8 = por %p89_p5, %p88_p3 }
  0x15   : > { %p1163_p9 = por %p166_p6, %p82_p1  ;;  %p172_p10 = scmp.eq.s32.totalorder %s736_s25, 1 }
  0x16   : > { %s1432_s30 = scalar_select %p1159_p8, 1, 0 }
  0x17   : > { %s1433_s6 = scalar_select %p1163_p9, 1, 0 }
  0x18   : > { %s1168_s7 = scalar_select %p73_p7, %s1056_s20, %s75_s27  }
  0x19   : > { %p1170_p11 = por %p172_p10, %p88_p3  ;;  %p802_p13 = scmp.lt.s32.totalorder %s1068_s23, 2 }
  0x1a   : > { %1434 = sst [smem:[#allocation18_spill]] %s1168_s7  ;;  %s1418_s9 = sand.u32 1, %s1056_s20  }
  0x1b   : > { %s1435_s8 = scalar_select %p1170_p11, 1, 0 }
  0x1c   : > { %s1179_s10 = sshll.u32 %s1418_s9, 3  ;;  %s1182_s11 = sshll.u32 %s1064_s22, 7 }
  0x1d   : > { %1436 = sst [smem:[#allocation19_spill]] %s1435_s8  ;;  %p1186_p0 = pnand %p802_p13, %p1151_p4 }
  0x1e   : > { %s245_s13 = sand.u32 1, %s1068_s23   ;;  %s1438_s2 = sld [smem:[#allocation20_spill]] }
  0x1f   : > { %s1437_s12 = scalar_select %p1186_p0, 1, 0 }
  0x20   : > { %s249_s17 = scalar_lea.vmem [#allocation5], %s1179_s10  ;;  %s1202_s27 = scalar_lea.sflag [#allocation6], %s245_s13 }
  0x21   : > { %s256_s25 = sshll.u32 %s249_s17, 4  ;;  %p1208_p4 = pneg %p1186_p0  ;;  %s1199_s25 = int_to_ptr.vmem [resolvable:$true] %s256_s25 }
  0x24   : > { %s1195_s16 = scalar_lea.hbm %s1438_s2, %s1182_s11  ;;  %s865_s17 = scalar_lea.hbm %s1438_s2, 256 }
  0x25   : > { %s860_s28 = scalar_lea.hbm %s1195_s16, 128  ;;  %p866_p7 = scmp.lt.u32.totalorder %s1195_s16, %s1438_s2 }
  0x26   : > { %p861_p3 = scmp.ne.s32.totalorder %s1195_s16, %s860_s28  ;;  %p867_p10 = scmp.lt.u32.totalorder %s865_s17, %s860_s28 }
  0x27   : > { %p869_p12 = scmp.lt.u32.totalorder %s860_s28, %s1195_s16 }
  0x28   : > { %p863_p5 = pnand %p1208_p4, %p861_p3  ;;  %p868_p13 = por %p867_p10, %p866_p7 }
  0x2a   : > { %p864_p6 = pneg %p863_p5  ;;  %p870_p1 = por %p869_p12, %p868_p13 }
  0x2c   : > { %p871_p2 = pnand %p870_p1, %p864_p6 }
  0x2e   : > { %874 = shalt.err (!%p871_p2)
}
  0x2f   : > { %s875_s13 = scalar_lea.vmem %s1199_s25, 128  ;;  %s1070_s14 = smov [#allocation5]  }
  0x30   : > { %p876_p3 = scmp.ne.s32.totalorder %s1199_s25, %s875_s13  ;;  %s880_s15 = sshll.u32 %s1070_s14, 4  ;;  %s881_s15 = int_to_ptr.vmem [resolvable:$false] %s880_s15 }
  0x31   : > { %s882_s26 = scalar_lea.vmem %s881_s15, 256  ;;  %p883_p9 = scmp.lt.s32.totalorder %s1199_s25, %s881_s15 }
  0x32   : > { %p878_p5 = pnand %p876_p3, %p1208_p4  ;;  %p884_p8 = scmp.lt.s32.totalorder %s882_s26, %s875_s13 }
  0x34   : > { %p879_p11 = pneg %p878_p5  ;;  %p885_p7 = por %p884_p8, %p883_p9 }
  0x36   : > { %p886_p10 = pnand %p885_p7, %p879_p11 }
  0x38   : > { %889 = shalt.err (!%p886_p10)
}
  0x39   : > { %791 = dma.hbm_to_vmem [thread:$0]  (!%p1186_p0), %s1195_s16, 128, %s1199_s25, %s1202_s27  }
  0x3a   : > { %p1440_p12 = scmp.lt.s32.totalorder %s1068_s23, 3  ;;  %p1441_p1 = scmp.ge.s32.totalorder %s1068_s23, 1 }
  0x3b   : > { %s1244_s13 = scalar_lea.hbm %s1413_s1, %s1182_s11  ;;  %s230_s14 = scalar_lea.vmem [#allocation2], %s1179_s10 }
  0x3c   : > { %p1236_p2 = pnand %p1441_p1, %p1440_p12  ;;  %s238_s15 = sshll.u32 %s230_s14, 4  ;;  %s1247_s15 = int_to_ptr.vmem [resolvable:$true] %s238_s15 }
  0x3d   : > { %s1253_s26 = scalar_lea.hbm %s1415_s3, %s1182_s11  ;;  %s1443_s2 = sand.u32 1, %s1056_s20  }
  0x3e   : > { %s1442_s9 = scalar_select %p1236_p2, 1, 0 }
  0x3f   : > { %s227_s22 = scalar_lea.sflag [#allocation3], %s1443_s2  ;;  %s890_s7 = scalar_lea.hbm %s1244_s13, 128 }
  0x40   : > { %p891_p8 = scmp.ne.s32.totalorder %s1244_s13, %s890_s7  ;;  %s895_s23 = scalar_lea.hbm %s1413_s1, 256 }
  0x41   : > { %p896_p6 = scmp.lt.u32.totalorder %s1244_s13, %s1413_s1  ;;  %p897_p13 = scmp.lt.u32.totalorder %s895_s23, %s890_s7 }
  0x42   : > { %p893_p9 = pnand %p891_p8, %p1208_p4  ;;  %p899_p5 = scmp.lt.u32.totalorder %s890_s7, %s1244_s13 }
  0x43   : > { %p898_p3 = por %p897_p13, %p896_p6 }
  0x44   : > { %p894_p11 = pneg %p893_p9 }
  0x45   : > { %p900_p7 = por %p899_p5, %p898_p3 }
  0x47   : > { %p901_p10 = pnand %p900_p7, %p894_p11 }
  0x49   : > { %904 = shalt.err (!%p901_p10)
}
  0x4a   : > { %s905_s2 = scalar_lea.vmem %s1247_s15, 128  ;;  %s1071_s11 = smov [#allocation2]  }
  0x4b   : > { %p906_p12 = scmp.ne.s32.totalorder %s1247_s15, %s905_s2  ;;  %s910_s16 = sshll.u32 %s1071_s11, 4  ;;  %s911_s16 = int_to_ptr.vmem [resolvable:$false] %s910_s16 }
  0x4c   : > { %s912_s8 = scalar_lea.vmem %s911_s16, 256  ;;  %p913_p9 = scmp.lt.s32.totalorder %s1247_s15, %s911_s16 }
  0x4d   : > { %p908_p1 = pnand %p906_p12, %p1208_p4  ;;  %p914_p2 = scmp.lt.s32.totalorder %s912_s8, %s905_s2 }
  0x4f   : > { %p909_p8 = pneg %p908_p1  ;;  %p915_p6 = por %p914_p2, %p913_p9 }
  0x51   : > { %p916_p13 = pnand %p915_p6, %p909_p8 }
  0x53   : > { %919 = shalt.err (!%p916_p13)
}
  0x54   : > { %788 = dma.hbm_to_vmem [thread:$0]  (!%p1186_p0), %s1244_s13, 128, %s1247_s15, %s227_s22  }
  0x55   : > { %s267_s23 = scalar_lea.vmem [#allocation7], %s1179_s10  ;;  %s920_s25 = scalar_lea.hbm %s1253_s26, 128 }
  0x56   : > { %s274_s7 = sshll.u32 %s267_s23, 4  ;;  %p921_p11 = scmp.ne.s32.totalorder %s1253_s26, %s920_s25  ;;  %s275_s7 = int_to_ptr.vmem [resolvable:$true] %s274_s7 }
  0x57   : > { %s925_s14 = scalar_lea.hbm %s1415_s3, 256  ;;  %p926_p5 = scmp.lt.u32.totalorder %s1253_s26, %s1415_s3 }
  0x58   : > { %p923_p2 = pnand %p921_p11, %p1208_p4  ;;  %p927_p7 = scmp.lt.u32.totalorder %s925_s14, %s920_s25 }
  0x59   : > { %p929_p12 = scmp.lt.u32.totalorder %s920_s25, %s1253_s26 }
  0x5a   : > { %p924_p3 = pneg %p923_p2  ;;  %p928_p10 = por %p927_p7, %p926_p5 }
  0x5c   : > { %p930_p1 = por %p929_p12, %p928_p10 }
  0x5e   : > { %p931_p8 = pnand %p930_p1, %p924_p3 }
  0x60   : > { %934 = shalt.err (!%p931_p8)
}
  0x61   : > { %s935_s22 = scalar_lea.vmem %s275_s7, 128  ;;  %s1072_s10 = smov [#allocation7]  }
  0x62   : > { %p936_p9 = scmp.ne.s32.totalorder %s275_s7, %s935_s22  ;;  %s940_s13 = sshll.u32 %s1072_s10, 4  ;;  %s941_s13 = int_to_ptr.vmem [resolvable:$false] %s940_s13 }
  0x63   : > { %s942_s15 = scalar_lea.vmem %s941_s13, 256  ;;  %p943_p11 = scmp.lt.s32.totalorder %s275_s7, %s941_s13 }
  0x64   : > { %p938_p6 = pnand %p936_p9, %p1208_p4  ;;  %p944_p2 = scmp.lt.s32.totalorder %s942_s15, %s935_s22 }
  0x66   : > { %p939_p13 = pneg %p938_p6  ;;  %p945_p0 = por %p944_p2, %p943_p11 }
  0x68   : > { %p946_p5 = pnand %p945_p0, %p939_p13 }
  0x6a   : > { %949 = shalt.err (!%p946_p5)
}
  0x6b   : > { %p1444_p7 = scmp.ne.s32.totalorder %s1437_s12, 0  ;;  %p1445_p3 = scmp.ne.s32.totalorder %s1442_s9, 0 }
  0x6c   : > { %s1300_s29 = sand.u32 (!%p1445_p3), 1, %s1052_s19   ;;  %p1446_p0 = scmp.ne.s32.totalorder (!%p1445_p3), %s1432_s30, 0 }
  0x6d   : > { %794 = dma.hbm_to_vmem [thread:$0]  (!%p1444_p7), %s1253_s26, 128, %s275_s7, %s1202_s27  }
  0x6e   : > { %283 = sbr.rel (%p1445_p3) target bundleno = 880 (0x370), region = 36  ;;  %s1303_s16 = sshll.u32 (!%p1445_p3), %s1300_s29, 3 }
  0x6f   : > { %s286_s8 = scalar_lea.sflag (!%p1445_p3), [#allocation3], %s1300_s29  ;;  %s289_s23 = scalar_lea.vmem (!%p1445_p3), [#allocation2], %s1303_s16 }
  0x75   : > { %1031 = dma.done.wait (%p1446_p0), %s286_s8, 128  }
  0x76   : > { %1033 = vsyncadd (%p1446_p0), %s286_s8, 4294967168  ;;  %s294_s12 = sand.u32 1, %s1139_s24   ;;  %s298_s9 = scalar_lea.vmem [#allocation5], %s1303_s16 }
  0x77   : > { %s295_s27 = scalar_lea.sflag [#allocation6], %s294_s12 }
  0x78   : > { %1035 = dma.done.wait (%p1446_p0), %s295_s27, 256  }
  0x79   : > { %1037 = vsyncadd (%p1446_p0), %s295_s27, 4294967040  ;;  %p352_p4 = scmp.lt.s32.totalorder %s1060_s21, 1  ;;  %v1073_v0 = vmov 0.0   ;;  %vm1074_vm0 = vmmov 0   ;;  %v1075_v1 = vmov 0   ;;  %vm359_vm1 = vcmask 261120  }
  0x7a   : > { %765 = vmatprep.subr.mxu0 %v1073_v0  ;;  %767 = vmatprep.mubr.msk.f32.mxu0 %vm1074_vm0, %v1073_v0  ;;  %v356_v2 = vld [vmem:[%s298_s9] sm:$0xff]  ;;  %v355_v3 = vld [vmem:[%s289_s23] sm:$0xff]  ;;  %v437_v6 = vlaneseq  ;;  %vm448_vm3 = vcmask 64512   ;;  %s307_s30 = scalar_lea.vmem [#allocation7], %s1303_s16  ;;  %s351_s28 = scalar_lea.vmem [#allocation9], %s1303_s16 }
  0x7b   : > { %855 = vset.pattern.permute.xlu0 %v1075_v1  ;;  %s353_s26 = scalar_select %p352_p4, %s1060_s21, 1  ;;  %770 = vmatprep.subr.mxu1 %v1073_v0  ;;  %v358_v5 = vmul.f32 0.17677669, %v355_v3  ;;  %v357_v18 = vld [vmem:[%s307_s30] sm:$0xff] }
  0x7c   : > { %772 = vmatprep.mubr.msk.f32.mxu1 %vm1074_vm0, %v1073_v0  ;;  %766 = vmatpush3.xpose.msk.msra.mxu0 %vm359_vm1, %v356_v2  ;;  %v438_v7 = vand.u32 127, %v437_v6  ;;  %s757_s17 = sshll.u32 %s1060_s21, 7  ;;  %s570_s22 = sshll.u32 %s351_s28, 4  ;;  %s571_s22 = int_to_ptr.vmem [resolvable:$true] %s570_s22 }
  0x7d   : > { %s354_s25 = scalar_lea.vmem %s1412_s0, %s353_s26  ;;  %771 = vmatpush3.msra.mxu1 %v357_v18  ;;  %s1336_s11 = scalar_lea.hbm %s1417_s5, %s757_s17 }
  0x7e   : > { %v753_v4 = vld [vmem:[%s354_s25] ss:$0 sm:$0xff]  ;;  %s542_s10 = scalar_lea.sflag [#allocation10], %s1300_s29  ;;  %s950_s13 = scalar_lea.vmem %s571_s22, 128 }
  0x7f   : > { %444 = vperm.xlu0 %855, %v753_v4   ;;  %768 = vmatmul.mubr.msk.f32.vlgmr.msra.gmra.mrb[0].mxu0 %vm359_vm1, %v358_v5  ;;  %p951_p10 = scmp.ne.s32.totalorder %s571_s22, %s950_s13  ;;  %p1447_p12 = scmp.ne.s32.totalorder %s1433_s6, 0 }
  0x80   : > { %s1076_s15 = smov [#allocation9]  }
  0x81   : > { %p952_p1 = pnand %p951_p10, %p1447_p12  ;;  %s954_s8 = sshll.u32 %s1076_s15, 4  ;;  %s955_s8 = int_to_ptr.vmem [resolvable:$false] %s954_s8 }
  0x82   : > { %s956_s23 = scalar_lea.vmem %s955_s8, 256  ;;  %p957_p9 = scmp.lt.s32.totalorder %s571_s22, %s955_s8 }
  0x83   : > { %p953_p8 = pneg %p952_p1  ;;  %p958_p6 = scmp.lt.s32.totalorder %s956_s23, %s950_s13 }
  0x85   : > { %p959_p13 = por %p958_p6, %p957_p9 }
  0x87   : > { %p960_p11 = pnand %p959_p13, %p953_p8 }
  0xfe   : > { %v445_v8 = vpop.permute.xlu0 %444 }
  0xff   : > { %vm446_vm2 = vcmp.lt.s32.totalorder %v438_v7, %v445_v8 }
 0x152   : > { %v432_v9 = vpop.f32.mrb[0].mxu0 }
 0x153   : > { %v447_v10 = vsel %vm446_vm2, %v432_v9, -1000000.0  ;;  %v769_v11 = vpop.f32.mrb[1].mxu0 }
 0x154   : > { %v449_v12 = vsel %vm448_vm3, %v447_v10, -inf }
 0x155   : > { %450 = vmax.xlane.f32.xlu0 %v449_v12 }
 0x1e2   : > { %v451_v13 = vpop.xlane.xlu0 %450 }
 0x1e3   : > { %v452_v14 = vsub.f32 %v447_v10, %v451_v13 }
 0x1e5   : > { %v453_v15 = vmul.f32 1.442695, %v452_v14 }
 0x1e7   : > { %856 = vpow2.f32 %v453_v15 }
 0x1f1   : > { %v857_v16 = vpop.eup %856 }
 0x1f2   : > { %v455_v17 = vsel %vm448_vm3, %v857_v16, 0.0 }
 0x1f3   : > { %456 = vadd.xlane.f32.xlu1 %v455_v17 }
 0x280   : > { %v457_v19 = vpop.xlane.xlu1 %456 }
 0x281   : > { %858 = vrcp.f32 %v457_v19 }
 0x28b   : > { %v859_v20 = vpop.eup %858 }
 0x28c   : > { %v460_v21 = vmul.f32 %v859_v20, %v857_v16 }
 0x28e   : > { %773 = vmatmul.mubr.msk.f32.vlgmr.msra.gmra.mrb[0].mxu1 %vm448_vm3, %v460_v21  ;;  %461 = vst.msk [vmem:[%s351_s28] sm:$0xff] %vm448_vm3, %v460_v21 }
 0x28f   : > { %963 = shalt.err (!%p960_p11)
}
 0x290   : > { %s964_s12 = scalar_lea.hbm %s1336_s11, 128  ;;  %s968_s26 = scalar_lea.hbm %s1417_s5, 256 }
 0x291   : > { %p965_p2 = scmp.ne.s32.totalorder %s1336_s11, %s964_s12  ;;  %p969_p3 = scmp.lt.u32.totalorder %s1336_s11, %s1417_s5 }
 0x292   : > { %p970_p0 = scmp.lt.u32.totalorder %s968_s26, %s964_s12  ;;  %p972_p10 = scmp.lt.u32.totalorder %s964_s12, %s1336_s11 }
 0x293   : > { %p966_p5 = pnand %p965_p2, %p1447_p12 }
 0x294   : > { %p971_p4 = por %p970_p0, %p969_p3 }
 0x295   : > { %p967_p7 = pneg %p966_p5 }
 0x296   : > { %p973_p1 = por %p972_p10, %p971_p4 }
 0x298   : > { %p974_p8 = pnand %p973_p1, %p967_p7 }
 0x29a   : > { %977 = shalt.err (!%p974_p8)
}
 0x29b   : > { %782 = dma.vmem_to_hbm [thread:$0]  (%p1447_p12), %s571_s22, 128, %s1336_s11, %s542_s10  }
 0x29c   : > { %s344_s25 = scalar_lea.vmem [#allocation8], %s1303_s16  ;;  %s1362_s2 = scalar_lea.hbm %s1416_s4, %s757_s17 }
 0x29d   : > { %s556_s30 = sshll.u32 %s344_s25, 4  ;;  %s537_s13 = scalar_lea.sflag [#allocation4], %s1300_s29  ;;  %s1364_s30 = int_to_ptr.vmem [resolvable:$true] %s556_s30 }
 0x29e   : > { %s978_s15 = scalar_lea.vmem %s1364_s30, 128  ;;  %s1077_s21 = smov [#allocation8]  }
 0x29f   : > { %p979_p9 = scmp.ne.s32.totalorder %s1364_s30, %s978_s15  ;;  %s982_s16 = sshll.u32 %s1077_s21, 4  ;;  %s983_s16 = int_to_ptr.vmem [resolvable:$false] %s982_s16 }
 0x2a0   : > { %s984_s17 = scalar_lea.vmem %s983_s16, 256  ;;  %p985_p11 = scmp.lt.s32.totalorder %s1364_s30, %s983_s16 }
 0x2a1   : > { %p980_p6 = pnand %p979_p9, %p1447_p12  ;;  %p986_p2 = scmp.lt.s32.totalorder %s984_s17, %s978_s15 }
 0x2a3   : > { %p981_p13 = pneg %p980_p6  ;;  %p987_p5 = por %p986_p2, %p985_p11 }
 0x2a5   : > { %p988_p7 = pnand %p987_p5, %p981_p13 }
 0x361   : > { %v531_v22 = vpop.f32.mrb[0].mxu1 }
 0x362   : > { %535 = vst.msk [vmem:[%s344_s25] sm:$0xff] %vm359_vm1, %v531_v22  ;;  %v774_v23 = vpop.f32.mrb[1].mxu1 }
 0x363   : > { %991 = shalt.err (!%p988_p7)
}
 0x364   : > { %s992_s29 = scalar_lea.hbm %s1362_s2, 128  ;;  %s996_s10 = scalar_lea.hbm %s1416_s4, 256 }
 0x365   : > { %p993_p3 = scmp.ne.s32.totalorder %s1362_s2, %s992_s29  ;;  %p997_p10 = scmp.lt.u32.totalorder %s1362_s2, %s1416_s4 }
 0x366   : > { %p998_p1 = scmp.lt.u32.totalorder %s996_s10, %s992_s29  ;;  %p1000_p9 = scmp.lt.u32.totalorder %s992_s29, %s1362_s2 }
 0x367   : > { %p994_p0 = pnand %p993_p3, %p1447_p12 }
 0x368   : > { %p999_p8 = por %p998_p1, %p997_p10 }
 0x369   : > { %p995_p4 = pneg %p994_p0 }
 0x36a   : > { %p1001_p6 = por %p1000_p9, %p999_p8 }
 0x36c   : > { %p1002_p13 = pnand %p1001_p6, %p995_p4 }
 0x36e   : > { %1005 = shalt.err (!%p1002_p13)
}
 0x36f   : > { %781 = dma.vmem_to_hbm [thread:$0]  (%p1447_p12), %s1364_s30, 128, %s1362_s2, %s537_s13  }
 0x370 PF: > { %s1448_s12 = sld [smem:[#allocation19_spill]]  ;;  %s1449_s27 = sld [smem:[#allocation16_spill]] }
 0x371   : > { %s582_s9 = sand.u32 1, %s1048_s18  }
 0x372   : > { %s583_s26 = scalar_lea.sflag [#allocation4], %s582_s9 }
 0x376   : > { %p1450_p11 = scmp.ne.s32.totalorder %s1448_s12, 0  ;;  %p1451_p2 = scmp.ge.s32.totalorder %s1449_s27, 2 }
 0x378   : > { %p796_p5 = pnand %p1451_p2, %p1450_p11 }
 0x37a   : > { %1039 = dma.done.wait (!%p796_p5), %s583_s26, 128  }
 0x37b   : > { %1041 = vsyncadd (!%p796_p5), %s583_s26, 4294967168  ;;  %s592_s24 = scalar_lea.sflag [#allocation10], %s582_s9 }
 0x37c   : > { %1043 = dma.done.wait (!%p796_p5), %s592_s24, 128  }
 0x37d   : > { %1045 = vsyncadd (!%p796_p5), %s592_s24, 4294967168  ;;  %s28_s23 = sadd.s32 1, %s1449_s27   ;;  %s1452_s6 = sld [smem:[#allocation18_spill]] }
 0x37e   : > { %p25_p7 = scmp.ge.s32.totalorder %s28_s23, 4   ;;  %s1453_s21 = sld [smem:[#allocation15_spill]] }
 0x37f   : > { %s1454_s22 = sld [smem:[#allocation17_spill]]  ;;  %s1455_s18 = smov %s1052_s19 }
 0x380   : > { %s1456_s19 = smov %s1056_s20  ;;  %27 = sbr.rel (!%p25_p7) target bundleno = 12 (0xc), region = 125 }
 0x383   : > { %s1457_s20 = smov %s1452_s6 }
 0x387   :  { %597 = vsyncpa [#allocation3], 1 }
 0x388   :  { %599 = vsyncpa [#allocation3 + $0x1], 1 }
 0x389   :  { %600 = vsyncpa [#allocation6], 1 }
 0x38a   :  { %602 = vsyncpa [#allocation6 + $0x1], 1 }
 0x38b   :  { %603 = vsyncpa [#allocation4], 1 }
 0x38c   :  { %605 = vsyncpa [#allocation4 + $0x1], 1 }
 0x38d   :  { %606 = vsyncpa [#allocation10], 1 }
 0x38e   :  { %608 = vsyncpa [#allocation10 + $0x1], 1 }

</bundles_post_ra>
